<compile_context>
chip_gen: v5e
topology: v5e:2x2
jax: 0.10.0
libtpu: 0.0.40
codegen_flags: <defaults>
</compile_context>

<pallas_src>
import jax
import jax.numpy as jnp
from jax.experimental import pallas as pl
from jax.experimental.pallas import tpu as pltpu


def _round_up(x, m):
    return ((x + m - 1) // m) * m


HID_PAD = 128   # hidden dim padded 64 -> 128 (lane-dense intermediates, full MXU K/N)
OUT_PAD = 8     # fused head width: action_space (4) + value (1) -> 8 (f32, tiny writeback)


def policy_kernel(x_ref,
                  w1_ref, b1_ref,
                  w2_ref, b2_ref,
                  w3_ref, b3_ref,
                  out_ref):
    # x_ref: [TB, S] f32; w1 f32, w2/w3 bf16; biases f32; out_ref: [TB, OUT_PAD] f32.
    x = x_ref[...]

    # fc1 (f32, tiny K) -> tanh
    h1 = jnp.tanh(
        jnp.dot(x, w1_ref[...], preferred_element_type=jnp.float32) + b1_ref[...]
    )                                                                  # [TB, HID_PAD] f32

    # fc2 (bf16 operands, f32 accum) -> tanh
    h2 = jnp.tanh(
        jnp.dot(h1.astype(jnp.bfloat16), w2_ref[...],
                preferred_element_type=jnp.float32) + b2_ref[...]
    )                                                                  # [TB, HID_PAD] f32

    # Fused heads: [mean | value | zero-pad] in one matmul + one narrow store.
    out_ref[...] = (
        jnp.dot(h2.astype(jnp.bfloat16), w3_ref[...],
                preferred_element_type=jnp.float32) + b3_ref[...]
    )                                                                  # [TB, OUT_PAD] f32


def prepare_params(p):
    """One-time parameter prep: fuse heads, pad hidden dim to 128 lanes, cast matmul
    operands of fc2/fc3 to bf16, and precompute softplus(sigma) (input-independent)."""
    S, H = p["w1"].shape
    A = p["w3m"].shape[1]
    assert A + 1 <= OUT_PAD
    bf = jnp.bfloat16

    w1 = jnp.pad(p["w1"], ((0, 0), (0, HID_PAD - H)))                        # [S,128] f32
    b1 = jnp.pad(p["b1"], ((0, 0), (0, HID_PAD - H)))                        # [1,128] f32
    w2 = jnp.pad(p["w2"], ((0, HID_PAD - H), (0, HID_PAD - H))).astype(bf)   # [128,128] bf16
    b2 = jnp.pad(p["b2"], ((0, 0), (0, HID_PAD - H)))                        # [1,128] f32

    w3 = jnp.concatenate([p["w3m"], p["w3c"]], axis=1)                       # [H, A+1]
    w3 = jnp.pad(w3, ((0, HID_PAD - H), (0, OUT_PAD - (A + 1)))).astype(bf)  # [128,8] bf16
    b3 = jnp.concatenate([p["b3m"], p["b3c"]], axis=1)
    b3 = jnp.pad(b3, ((0, 0), (0, OUT_PAD - (A + 1))))                       # [1,8] f32

    sigma = jax.nn.softplus(p["sigma"])                                      # [1,A] f32
    return {"w1": w1, "b1": b1, "w2": w2, "b2": b2, "w3": w3, "b3": b3, "sigma": sigma}


@jax.jit
def policy_forward(x, prepped):
    """x: [B, state_space] f32; prepped = prepare_params(raw_params).
    Returns (action_mean [B,A], sigma [B,A], value [B,1])."""
    B, S = x.shape
    A = prepped["sigma"].shape[1]

    # ---- batch tiling: big tiles (low per-step overhead), but keep >=2-4 grid steps
    # when the batch allows so both v7x TensorCores get work. -------------------------
    Bp = _round_up(B, 8)
    TB = min(2048, _round_up(max(Bp // 4, 8), 8))
    Bp = _round_up(Bp, TB)
    x_p = x if Bp == B else jnp.pad(x, ((0, Bp - B), (0, 0)))

    grid = (Bp // TB,)

    flops = 2 * Bp * (S * HID_PAD + HID_PAD * HID_PAD + HID_PAD * OUT_PAD)
    transcendentals = 2 * Bp * HID_PAD
    bytes_accessed = (x_p.size * 4 + Bp * OUT_PAD * 4
                      + prepped["w1"].size * 4 + prepped["w2"].size * 2
                      + prepped["w3"].size * 2 + 3 * HID_PAD * 4)

    out = pl.pallas_call(
        policy_kernel,
        out_shape=jax.ShapeDtypeStruct((Bp, OUT_PAD), jnp.float32),
        grid=grid,
        in_specs=[
            pl.BlockSpec((TB, S), lambda i: (i, 0)),              # x: batch-blocked
            pl.BlockSpec((S, HID_PAD), lambda i: (0, 0)),         # w1: VMEM-resident
            pl.BlockSpec((1, HID_PAD), lambda i: (0, 0)),         # b1
            pl.BlockSpec((HID_PAD, HID_PAD), lambda i: (0, 0)),   # w2
            pl.BlockSpec((1, HID_PAD), lambda i: (0, 0)),         # b2
            pl.BlockSpec((HID_PAD, OUT_PAD), lambda i: (0, 0)),   # fused head weights
            pl.BlockSpec((1, OUT_PAD), lambda i: (0, 0)),         # fused head bias
        ],
        out_specs=pl.BlockSpec((TB, OUT_PAD), lambda i: (i, 0)),
        compiler_params=pltpu.CompilerParams(
            dimension_semantics=("parallel",),                    # v7x: shard batch over 2 TCs
        ),
        cost_estimate=pl.CostEstimate(flops=flops,
                                      transcendentals=transcendentals,
                                      bytes_accessed=bytes_accessed),
    )(x_p, prepped["w1"], prepped["b1"], prepped["w2"], prepped["b2"],
      prepped["w3"], prepped["b3"])

    mean = out[:B, :A]
    value = out[:B, A:A + 1]
    sigma = jnp.broadcast_to(prepped["sigma"], (B, A))
    return mean, sigma, value


def init_params(key, state_space, action_space, hidden=64, init_sigma=0.5):
    """Mirrors Policy.__init__ / init_weights: normal(0,1) weights, zero biases,
    sigma = 0.5. Weights stored transposed ([in, out]) relative to PyTorch."""
    k1, k2, k3, k4 = jax.random.split(key, 4)
    return {
        "w1":  jax.random.normal(k1, (state_space, hidden), jnp.float32),
        "b1":  jnp.zeros((1, hidden), jnp.float32),
        "w2":  jax.random.normal(k2, (hidden, hidden), jnp.float32),
        "b2":  jnp.zeros((1, hidden), jnp.float32),
        "w3m": jax.random.normal(k3, (hidden, action_space), jnp.float32),
        "b3m": jnp.zeros((1, action_space), jnp.float32),
        "w3c": jax.random.normal(k4, (hidden, 1), jnp.float32),
        "b3c": jnp.zeros((1, 1), jnp.float32),
        "sigma": jnp.full((1, action_space), init_sigma, jnp.float32),
    }


def reference_forward(x, p):
    """Pure-JAX reference matching the kernel math (f32 fc1, bf16-operand fc2/fc3)."""
    f32, bf = jnp.float32, jnp.bfloat16
    h1 = jnp.tanh(jnp.dot(x, p["w1"], preferred_element_type=f32,
                          precision=jax.lax.Precision.HIGHEST) + p["b1"])
    h2 = jnp.tanh(jnp.dot(h1.astype(bf), p["w2"].astype(bf),
                          preferred_element_type=f32) + p["b2"])
    mean = jnp.dot(h2.astype(bf), p["w3m"].astype(bf),
                   preferred_element_type=f32) + p["b3m"]
    value = jnp.dot(h2.astype(bf), p["w3c"].astype(bf),
                    preferred_element_type=f32) + p["b3c"]
    sigma = jnp.broadcast_to(jax.nn.softplus(p["sigma"]), mean.shape)
    return mean, sigma, value


if __name__ == "__main__":
    STATE, ACTION, HIDDEN = 8, 4, 64

    key = jax.random.PRNGKey(0)
    kx, kx2, kp = jax.random.split(key, 3)
    params = init_params(kp, STATE, ACTION, HIDDEN)
    prepped = prepare_params(params)

    # --- small batch (single grid step) ------------------------------------------------
    B = 2
    x = jax.random.normal(kx, (B, STATE), jnp.float32)
    mean, sigma, value = policy_forward(x, prepped)
    jax.block_until_ready((mean, sigma, value))

    mean_r, sigma_r, value_r = reference_forward(x, params)
    assert mean.shape == (B, ACTION) and value.shape == (B, 1) and sigma.shape == (B, ACTION)
    assert jnp.allclose(mean, mean_r, atol=1e-2, rtol=1e-2)
    assert jnp.allclose(sigma, sigma_r, atol=1e-3, rtol=1e-3)
    assert jnp.allclose(value, value_r, atol=1e-2, rtol=1e-2)

    # --- larger, unaligned batch (multi-step parallel grid + batch padding) -------------
    B2 = 100
    x2 = jax.random.normal(kx2, (B2, STATE), jnp.float32)
    mean2, sigma2, value2 = policy_forward(x2, prepped)
    jax.block_until_ready((mean2, sigma2, value2))

    mean2_r, sigma2_r, value2_r = reference_forward(x2, params)
    assert mean2.shape == (B2, ACTION) and value2.shape == (B2, 1)
    assert jnp.allclose(mean2, mean2_r, atol=1e-2, rtol=1e-2)
    assert jnp.allclose(sigma2, sigma2_r, atol=1e-3, rtol=1e-3)
    assert jnp.allclose(value2, value2_r, atol=1e-2, rtol=1e-2)

    print("KERNEL_OK")
</pallas_src>

<mosaic_0001>
module attributes {stable_mosaic.version = 11 : i64} {
  func.func @policy_kernel(%arg0: i32, %arg1: memref<8x8xf32, #tpu.memory_space<vmem>>, %arg2: memref<8x128xf32, #tpu.memory_space<vmem>>, %arg3: memref<1x128xf32, #tpu.memory_space<vmem>>, %arg4: memref<128x128xbf16, #tpu.memory_space<vmem>>, %arg5: memref<1x128xf32, #tpu.memory_space<vmem>>, %arg6: memref<128x8xbf16, #tpu.memory_space<vmem>>, %arg7: memref<1x8xf32, #tpu.memory_space<vmem>>, %arg8: memref<8x8xf32, #tpu.memory_space<vmem>>) attributes {dimension_semantics = [#tpu.dimension_semantics<parallel>], iteration_bounds = array<i64: 1>, scalar_prefetch = 0 : i64, scratch_operands = 0 : i64, tpu.core_type = #tpu.core_type<tc>, window_params = [{transform_indices = @transform_0, window_bounds = array<i64: 8, 8>}, {pipeline_mode = #tpu.pipeline_mode<synchronous>, transform_indices = @transform_1, window_bounds = array<i64: 8, 128>}, {pipeline_mode = #tpu.pipeline_mode<synchronous>, transform_indices = @transform_2, window_bounds = array<i64: 1, 128>}, {pipeline_mode = #tpu.pipeline_mode<synchronous>, transform_indices = @transform_3, window_bounds = array<i64: 128, 128>}, {pipeline_mode = #tpu.pipeline_mode<synchronous>, transform_indices = @transform_4, window_bounds = array<i64: 1, 128>}, {pipeline_mode = #tpu.pipeline_mode<synchronous>, transform_indices = @transform_5, window_bounds = array<i64: 128, 8>}, {pipeline_mode = #tpu.pipeline_mode<synchronous>, transform_indices = @transform_6, window_bounds = array<i64: 1, 8>}, {transform_indices = @transform_7, window_bounds = array<i64: 8, 8>}]} {
    %c0 = arith.constant 0 : index
    %c0_0 = arith.constant 0 : index
    %0 = vector.load %arg1[%c0, %c0_0] : memref<8x8xf32, #tpu.memory_space<vmem>>, vector<8x8xf32>
    %c0_1 = arith.constant 0 : index
    %c0_2 = arith.constant 0 : index
    %1 = vector.load %arg2[%c0_1, %c0_2] : memref<8x128xf32, #tpu.memory_space<vmem>>, vector<8x128xf32>
    %cst = arith.constant dense<0.000000e+00> : vector<8x128xf32>
    %2 = tpu.matmul %0, %1, %cst {dimension_numbers = #tpu.dot_dimension_numbers<[1], [0], [0], [1], [0, 0, 1, 1], [], []>} : vector<8x8xf32>, vector<8x128xf32>, vector<8x128xf32> -> vector<8x128xf32>
    %c0_3 = arith.constant 0 : index
    %c0_4 = arith.constant 0 : index
    %3 = vector.load %arg3[%c0_3, %c0_4] : memref<1x128xf32, #tpu.memory_space<vmem>>, vector<1x128xf32>
    %4 = vector.broadcast %3 : vector<1x128xf32> to vector<8x128xf32>
    %5 = arith.addf %2, %4 : vector<8x128xf32>
    %6 = math.tanh %5 : vector<8x128xf32>
    %7 = arith.truncf %6 : vector<8x128xf32> to vector<8x128xbf16>
    %c0_5 = arith.constant 0 : index
    %c0_6 = arith.constant 0 : index
    %8 = vector.load %arg4[%c0_5, %c0_6] : memref<128x128xbf16, #tpu.memory_space<vmem>>, vector<128x128xbf16>
    %cst_7 = arith.constant dense<0.000000e+00> : vector<8x128xf32>
    %9 = tpu.matmul %7, %8, %cst_7 {dimension_numbers = #tpu.dot_dimension_numbers<[1], [0], [0], [1], [0, 0, 1, 1], [], []>} : vector<8x128xbf16>, vector<128x128xbf16>, vector<8x128xf32> -> vector<8x128xf32>
    %c0_8 = arith.constant 0 : index
    %c0_9 = arith.constant 0 : index
    %10 = vector.load %arg5[%c0_8, %c0_9] : memref<1x128xf32, #tpu.memory_space<vmem>>, vector<1x128xf32>
    %11 = vector.broadcast %10 : vector<1x128xf32> to vector<8x128xf32>
    %12 = arith.addf %9, %11 : vector<8x128xf32>
    %13 = math.tanh %12 : vector<8x128xf32>
    %14 = arith.truncf %13 : vector<8x128xf32> to vector<8x128xbf16>
    %c0_10 = arith.constant 0 : index
    %c0_11 = arith.constant 0 : index
    %15 = vector.load %arg6[%c0_10, %c0_11] : memref<128x8xbf16, #tpu.memory_space<vmem>>, vector<128x8xbf16>
    %cst_12 = arith.constant dense<0.000000e+00> : vector<8x8xf32>
    %16 = tpu.matmul %14, %15, %cst_12 {dimension_numbers = #tpu.dot_dimension_numbers<[1], [0], [0], [1], [0, 0, 1, 1], [], []>} : vector<8x128xbf16>, vector<128x8xbf16>, vector<8x8xf32> -> vector<8x8xf32>
    %c0_13 = arith.constant 0 : index
    %c0_14 = arith.constant 0 : index
    %17 = vector.load %arg7[%c0_13, %c0_14] : memref<1x8xf32, #tpu.memory_space<vmem>>, vector<1x8xf32>
    %18 = vector.broadcast %17 : vector<1x8xf32> to vector<8x8xf32>
    %19 = arith.addf %16, %18 : vector<8x8xf32>
    %c0_15 = arith.constant 0 : index
    %c0_16 = arith.constant 0 : index
    %20 = vector.load %arg8[%c0_15, %c0_16] : memref<8x8xf32, #tpu.memory_space<vmem>>, vector<8x8xf32>
    tpu.vector_store %arg8[%c0_15, %c0_16], %19 {strides = array<i32>} : memref<8x8xf32, #tpu.memory_space<vmem>>, vector<8x8xf32>,
    return
  }
  func.func @transform_0(%arg0: i32) -> (i32, i32) {
    %c0_i32 = arith.constant 0 : i32
    %c0_i32_0 = arith.constant 0 : i32
    return %arg0, %c0_i32 : i32, i32
  }
  func.func @transform_1(%arg0: i32) -> (i32, i32) {
    %c0_i32 = arith.constant 0 : i32
    %c0_i32_0 = arith.constant 0 : i32
    %c0_i32_1 = arith.constant 0 : i32
    return %c0_i32, %c0_i32_0 : i32, i32
  }
  func.func @transform_2(%arg0: i32) -> (i32, i32) {
    %c0_i32 = arith.constant 0 : i32
    %c0_i32_0 = arith.constant 0 : i32
    %c0_i32_1 = arith.constant 0 : i32
    return %c0_i32, %c0_i32_0 : i32, i32
  }
  func.func @transform_3(%arg0: i32) -> (i32, i32) {
    %c0_i32 = arith.constant 0 : i32
    %c0_i32_0 = arith.constant 0 : i32
    %c0_i32_1 = arith.constant 0 : i32
    return %c0_i32, %c0_i32_0 : i32, i32
  }
  func.func @transform_4(%arg0: i32) -> (i32, i32) {
    %c0_i32 = arith.constant 0 : i32
    %c0_i32_0 = arith.constant 0 : i32
    %c0_i32_1 = arith.constant 0 : i32
    return %c0_i32, %c0_i32_0 : i32, i32
  }
  func.func @transform_5(%arg0: i32) -> (i32, i32) {
    %c0_i32 = arith.constant 0 : i32
    %c0_i32_0 = arith.constant 0 : i32
    %c0_i32_1 = arith.constant 0 : i32
    return %c0_i32, %c0_i32_0 : i32, i32
  }
  func.func @transform_6(%arg0: i32) -> (i32, i32) {
    %c0_i32 = arith.constant 0 : i32
    %c0_i32_0 = arith.constant 0 : i32
    %c0_i32_1 = arith.constant 0 : i32
    return %c0_i32, %c0_i32_0 : i32, i32
  }
  func.func @transform_7(%arg0: i32) -> (i32, i32) {
    %c0_i32 = arith.constant 0 : i32
    %c0_i32_0 = arith.constant 0 : i32
    return %arg0, %c0_i32 : i32, i32
  }
}

</mosaic_0001>

<bundles_post_ra>
// kernel: policy_forward.1
= control target key start
LH: loop header
LB: loop body
LE: loop exit
PB: predicated region body
PF: predicated region fallthrough
CT: control target
= control target key end

     0   :  { %vm32_vm0 = vcmask 64512   ;;  %s423_s1 = inlined_call_operand.vmem [shape: f32[8,128], index: 1, kind: input, shape index: {}]   ;;  %s424_s0 = inlined_call_operand.vmem [shape: f32[8,8], index: 0, kind: input, shape index: {}]   ;;  %s425_s3 = inlined_call_operand.vmem [shape: bf16[128,128], index: 3, kind: input, shape index: {}]   ;;  %s426_s2 = inlined_call_operand.vmem [shape: f32[1,128], index: 2, kind: input, shape index: {}]   ;;  %s427_s4 = inlined_call_operand.vmem [shape: f32[1,128], index: 4, kind: input, shape index: {}]   ;;  %s428_s5 = inlined_call_operand.vmem [shape: bf16[128,8], index: 5, kind: input, shape index: {}]   ;;  %s429_s6 = inlined_call_operand.vmem [shape: f32[1,8], index: 6, kind: input, shape index: {}]   ;;  %s430_s7 = inlined_call_operand.vmem [shape: f32[8,8], index: 7, kind: output, shape index: {}]  }
   0x1   :  { %v27_v0 = vld [vmem:[%s423_s1] sm:$0xff]  ;;  %v299_v2 = vld [vmem:[%s425_s3 + $0x38] sm:$0xff]  ;;  %v298_v3 = vld [vmem:[%s425_s3 + $0x30] sm:$0xff] }
   0x2   :  { %v26_v1 = vld [vmem:[%s424_s0] sm:$0xff]  ;;  %51 = vmatpush.msra.mxu0 %v27_v0  ;;  %126 = vmatpush.bf16.msra.mxu1 %v299_v2  ;;  %v297_v4 = vld [vmem:[%s425_s3 + $0x28] sm:$0xff]  ;;  %v295_v6 = vld [vmem:[%s425_s3 + $0x18] sm:$0xff] }
   0x3   :  { %227 = vmatmul.msk.f32.vlgmr.msra.gmra.mxu0 %vm32_vm0, %v26_v1  ;;  %v296_v5 = vld [vmem:[%s425_s3 + $0x20] sm:$0xff]  ;;  %v294_v7 = vld [vmem:[%s425_s3 + $0x10] sm:$0xff]  ;;  %v293_v8 = vld [vmem:[%s425_s3 + $0x8] sm:$0xff] }
   0x4   :  { %v292_v9 = vld [vmem:[%s425_s3] sm:$0xff]  ;;  %v307_v10 = vld [vmem:[%s428_s5 + $0x38] sm:$0xff]  ;;  %v306_v11 = vld [vmem:[%s428_s5 + $0x30] sm:$0xff] }
   0x5   :  { %209 = vmatpush.bf16.msra.mxu2 %v307_v10  ;;  %v305_v12 = vld [vmem:[%s428_s5 + $0x28] sm:$0xff]  ;;  %v304_v13 = vld [vmem:[%s428_s5 + $0x20] sm:$0xff]  ;;  %v303_v14 = vld [vmem:[%s428_s5 + $0x18] sm:$0xff] }
   0x6   :  { %127 = vmatpush.bf16.msra.mxu1 %v298_v3  ;;  %v308_v15 = vld [vmem:[%s426_s2] ss:$0 sm:$0xff]  ;;  %v302_v20 = vld [vmem:[%s428_s5 + $0x10] sm:$0xff]  ;;  %v301_v21 = vld [vmem:[%s428_s5 + $0x8] sm:$0xff] }
   0x7   :  { %v300_v22 = vld [vmem:[%s428_s5] sm:$0xff] }
   0x8   :  { %v309_v23 = vld [vmem:[%s427_s4] ss:$0 sm:$0xff] }
   0x9   :  { %210 = vmatpush.bf16.msra.mxu2 %v306_v11  ;;  %v310_v29 = vld [vmem:[%s429_s6] ss:$0 sm:$0xff] }
   0xa   :  { %128 = vmatpush.bf16.msra.mxu1 %v297_v4 }
   0xd   :  { %211 = vmatpush.bf16.msra.mxu2 %v305_v12 }
   0xe   :  { %129 = vmatpush.bf16.msra.mxu1 %v296_v5 }
  0x11   :  { %212 = vmatpush.bf16.msra.mxu2 %v304_v13 }
  0x12   :  { %130 = vmatpush.bf16.msra.mxu1 %v295_v6 }
  0x15   :  { %213 = vmatpush.bf16.msra.mxu2 %v303_v14 }
  0x16   :  { %131 = vmatpush.bf16.msra.mxu1 %v294_v7 }
  0x19   :  { %214 = vmatpush.bf16.msra.mxu2 %v302_v20 }
  0x1a   :  { %132 = vmatpush.bf16.msra.mxu1 %v293_v8 }
  0x1d   :  { %215 = vmatpush.bf16.msra.mxu2 %v301_v21 }
  0x1e   :  { %133 = vmatpush.bf16.msra.mxu1 %v292_v9 }
  0x21   :  { %216 = vmatpush.bf16.msra.mxu2 %v300_v22 }
  0x80   :  { %v53_v16 = vpop.f32.mrf.mxu0 }
  0x81   :  { %v54_v17 = vadd.f32 %v308_v15, %v53_v16 }
  0x83   :  { %311 = vtanh.f32 %v54_v17 }
  0x89   :  { %v312_v18 = vpop.eup %311 }
  0x8a   :  { %v57_v19 = vpack.c.bf16 %v312_v18, %v312_v18 }
  0x8c   :  { %134 = vmatmul.bf16.vlgmr.msra.gmra.mxu1 %v57_v19 }
 0x109   :  { %v135_v24 = vpop.f32.mrf.mxu1 }
 0x10a   :  { %v136_v25 = vadd.f32 %v309_v23, %v135_v24 }
 0x10c   :  { %313 = vtanh.f32 %v136_v25 }
 0x111   :  { %v137_v26 = vpop.f32.mrf.mxu1 }
 0x112   :  { %v314_v27 = vpop.eup %313 }
 0x113   :  { %v140_v28 = vpack.c.bf16 %v314_v27, %v314_v27 }
 0x115   :  { %217 = vmatmul.bf16.vlgmr.msra.gmra.mxu2 %v140_v28 }
 0x198   :  { %v218_v30 = vpop.f32.mrf.mxu2 }
 0x199   :  { %v219_v31 = vadd.f32 %v310_v29, %v218_v30 }
 0x19b   :  { %222 = vst.msk [vmem:[%s430_s7] sm:$0xff] %vm32_vm0, %v219_v31 }
 0x1a0   :  { %v220_v32 = vpop.f32.mrf.mxu2 }

</bundles_post_ra>
